<compile_context>
chip_gen: v5e
topology: v5e:2x2
jax: 0.10.0
libtpu: 0.0.40
codegen_flags: <defaults>
</compile_context>

<pallas_src>
import jax
import jax.numpy as jnp
from jax.experimental import pallas as pl
from jax.experimental.pallas import tpu as pltpu


def _round_up(x, m):
    return ((x + m - 1) // m) * m


# ----------------------- small synthetic configuration -----------------------
B = 2                        # batch
K = 4                        # num_classes (label_manager.num_segmentation_heads)
M = 8                        # num_prototype (configer: protoseg.num_prototype)
NQ = 8                       # n_quires (module uses 100; small here)
DPROTO = NQ * 10             # feat_norm / prototype feature dim (n_quires * 10)
DPAD = 128                   # DPROTO padded to a lane multiple (1000 -> 1024 at NQ=100)
QPAD = _round_up(K, 8)       # mask-stream query dim padded to full sublanes
DZ, HZ, WZ = 4, 12, 16       # pred_masks spatial dims (S deliberately not a TS multiple)
S = DZ * HZ * WZ             # flattened spatial size (768)
TS_TARGET = 512              # spatial tile target; sweep 1024-2048 at real SAM sizes
TS = min(TS_TARGET, _round_up(S, 128))
S_PAD = _round_up(S, TS)     # spatial size padded to a tile multiple
EPS_LN = 1e-5                # nn.LayerNorm default eps
EPS_L2 = 1e-12               # F.normalize default eps

# bf16 HBM stream for pred_masks is the big bandwidth win on every generation;
# all in-kernel elementwise math and the accumulation stay f32.
PRED_STREAM_DTYPE = jnp.bfloat16


# ------------------------------ head kernel ----------------------------------
def _head_kernel(c_ref, fg_ref, fb_ref, pt_ref, mg_ref, mb_ref, cls_ref):
    # c_ref:   (1, K, DPAD)  per-batch tokens (queries x padded features)
    # fg/fb:   (1, DPAD)     feat_norm affine (zero in the pad region)
    # pt_ref:  (DPAD, M*K)   l2-normalized prototypes, m-major columns
    # mg/mb:   (1, K)        mask_norm affine
    # cls_ref: (1, K, K)     softmax(mask_cls) for this batch  [q, c]
    x = c_ref[0].astype(jnp.float32)                               # (K, DPAD)

    # feat_norm: LayerNorm over the TRUE DPROTO features (two-pass, centered).
    # Pads are zero, so the sum over the padded lane width equals the true sum;
    # the centered pad lanes are re-zeroed with an iota mask before the sumsq.
    feat_mask = jax.lax.broadcasted_iota(jnp.int32, (1, DPAD), 1) < DPROTO
    inv_d = 1.0 / DPROTO
    mu = jnp.sum(x, axis=-1, keepdims=True) * inv_d
    xc = jnp.where(feat_mask, x - mu, 0.0)
    var = jnp.sum(xc * xc, axis=-1, keepdims=True) * inv_d
    xn = xc * jax.lax.rsqrt(var + EPS_LN)
    xn = xn * fg_ref[...] + fb_ref[...]                            # pads stay exactly 0

    # l2_normalize (F.normalize): x * rsqrt(max(||x||^2, eps^2))
    ssq = jnp.sum(xn * xn, axis=-1, keepdims=True)
    xn = xn * jax.lax.rsqrt(jnp.maximum(ssq, EPS_L2 * EPS_L2))

    # Single MXU contraction against every (class, prototype) pair.
    sims = jnp.dot(xn, pt_ref[...], preferred_element_type=jnp.float32)   # (K, M*K)

    # amax over the M prototypes: columns are m-major, each m owns a contiguous
    # K-lane group -> static-slice max tree (no width-1 concatenate).
    seg = sims[:, 0:K]
    for m in range(1, M):
        seg = jnp.maximum(seg, sims[:, m * K:(m + 1) * K])         # (K, K)

    # mask_norm: LayerNorm over the class dim.
    mu2 = jnp.mean(seg, axis=-1, keepdims=True)
    d2 = seg - mu2
    var2 = jnp.mean(d2 * d2, axis=-1, keepdims=True)
    seg = d2 * jax.lax.rsqrt(var2 + EPS_LN) * mg_ref[...] + mb_ref[...]

    cls_ref[0] = jax.nn.softmax(seg, axis=-1)                      # [q, c]


def head_forward(c_pad, fg, fb, p_t, mg, mb):
    b = c_pad.shape[0]
    return pl.pallas_call(
        _head_kernel,
        grid=(b,),
        in_specs=[
            pl.BlockSpec((1, K, DPAD), lambda i: (i, 0, 0)),
            pl.BlockSpec((1, DPAD), lambda i: (0, 0)),
            pl.BlockSpec((1, DPAD), lambda i: (0, 0)),
            pl.BlockSpec((DPAD, M * K), lambda i: (0, 0)),
            pl.BlockSpec((1, K), lambda i: (0, 0)),
            pl.BlockSpec((1, K), lambda i: (0, 0)),
        ],
        out_specs=pl.BlockSpec((1, K, K), lambda i: (i, 0, 0)),
        out_shape=jax.ShapeDtypeStruct((b, K, K), jnp.float32),
        compiler_params=pltpu.CompilerParams(dimension_semantics=("parallel",)),
    )(c_pad, fg, fb, p_t, mg, mb)


# ---------------------------- streaming kernel --------------------------------
def _stream_kernel(clsT_ref, pred_ref, out_ref):
    # clsT_ref: (1, K, QPAD)  softmax(mask_cls) pre-transposed, zero pad columns
    # pred_ref: (1, QPAD, TS) mask logits tile (bf16 stream), zero pad rows
    # out_ref:  (1, K, TS)    semseg tile (lane-dense store)
    x = pred_ref[0].astype(jnp.float32)                            # (QPAD, TS)
    # sigmoid(x) = 0.5*(tanh(0.5x)+1): one EUP op/element instead of exp+recip.
    probs = 0.5 * (jnp.tanh(0.5 * x) + 1.0)
    # semseg[c, s] = sum_q clsT[c, q] * probs[q, s]: LHS last dim contracted,
    # no per-tile relayout.  Padded queries contribute 0 (zero cls columns).
    out = jnp.dot(clsT_ref[0], probs, preferred_element_type=jnp.float32)  # (K, TS)
    out_ref[0] = out.astype(out_ref.dtype)


def stream_forward(clsT, pred_flat):
    b = clsT.shape[0]
    ns = pl.cdiv(S_PAD, TS)
    # VMEM budget (double-buffered pred + out): ~2*(QPAD*itemsize + K*4)*TS per
    # step — well under 1 MiB here.  Re-derive before raising TS to 1024-2048 at
    # real SAM sizes; v7x has only 64 MiB physical (32 MiB scoped default).
    return pl.pallas_call(
        _stream_kernel,
        grid=(b, ns),
        in_specs=[
            pl.BlockSpec((1, K, QPAD), lambda i, j: (i, 0, 0)),
            # TODO(synk): add pipeline_mode=pl.Buffered(3) on this spec only if
            #             xprof still shows exposed DMA after the TS sweep.
            pl.BlockSpec((1, QPAD, TS), lambda i, j: (i, 0, j)),
        ],
        out_specs=pl.BlockSpec((1, K, TS), lambda i, j: (i, 0, j)),
        out_shape=jax.ShapeDtypeStruct((b, K, S_PAD), jnp.float32),
        compiler_params=pltpu.CompilerParams(
            dimension_semantics=("parallel", "parallel"),
            vmem_limit_bytes=32 * 1024 * 1024),
    )(clsT, pred_flat)


# ------------------------------ model forward ---------------------------------
def forward_inference(pred_logits, pred_masks, params,
                      pred_stream_dtype=PRED_STREAM_DTYPE):
    """Inference branch of ProtoSamMask2FormerNet.forward (not self.training).

    pred_logits: (B, DPROTO, K)     stand-in for concat(outputs['pred_logits'], 1)
    pred_masks:  (B, K, DZ, HZ, WZ) stand-in for outputs['pred_masks']
    returns preds_list: (B, K, DZ, HZ, WZ)
    """
    b = pred_logits.shape[0]
    pad_d = DPAD - DPROTO

    # rearrange 'b c d -> (b d) c', kept batched as (B, K queries, DPROTO), then
    # zero-pad the feature axis to a full lane multiple.
    c = jnp.transpose(pred_logits, (0, 2, 1)).astype(jnp.float32)
    c_pad = jnp.pad(c, ((0, 0), (0, 0), (0, pad_d)))
    fg = jnp.pad(params["feat_gamma"].astype(jnp.float32), (0, pad_d)).reshape(1, DPAD)
    fb = jnp.pad(params["feat_beta"].astype(jnp.float32), (0, pad_d)).reshape(1, DPAD)

    # prototypes.data.copy_(l2_normalize(prototypes)) — hoisted out of the kernel
    # (constant at inference).  m-major flatten so each prototype index owns a
    # contiguous K-lane column group; transpose so the kernel contracts LHS last.
    p = params["prototypes"].astype(jnp.float32)
    p = p * jax.lax.rsqrt(
        jnp.maximum(jnp.sum(p * p, axis=-1, keepdims=True), EPS_L2 * EPS_L2))
    p_flat = jnp.transpose(p, (1, 0, 2)).reshape(M * K, DPROTO)
    p_t = jnp.pad(p_flat, ((0, 0), (0, pad_d))).T                  # (DPAD, M*K)

    mg = params["mask_gamma"].astype(jnp.float32).reshape(1, K)
    mb = params["mask_beta"].astype(jnp.float32).reshape(1, K)

    # Tiny per-batch head (Pallas micro-kernel), then transpose + query-pad the
    # (K, K) cls matrix ONCE per batch in the wrapper (cheap XLA op).
    cls = head_forward(c_pad, fg, fb, p_t, mg, mb)                 # (B, q=K, c=K)
    clsT = jnp.transpose(cls, (0, 2, 1))                           # (B, c=K, q=K)
    clsT = jnp.pad(clsT, ((0, 0), (0, 0), (0, QPAD - K)))          # (B, K, QPAD)

    # semantic_inference mask stream: pad queries to QPAD sublanes and spatial
    # to a tile multiple, stream in bf16 (the dominant HBM traffic).
    pred_flat = pred_masks.reshape(b, K, S).astype(jnp.float32)
    pred_flat = jnp.pad(pred_flat, ((0, 0), (0, QPAD - K), (0, S_PAD - S)))
    pred_flat = pred_flat.astype(pred_stream_dtype)

    semseg = stream_forward(clsT, pred_flat)                       # (B, K, S_PAD) f32
    # TODO(synk): emit semseg in bf16 if downstream accepts it (halves writeback).
    return semseg[:, :, :S].reshape(b, K, DZ, HZ, WZ)


# --------------------------- pure-JAX reference --------------------------------
def _reference(pred_logits, pred_masks, params):
    b = pred_logits.shape[0]
    c = jnp.transpose(pred_logits, (0, 2, 1)).reshape(b * K, DPROTO)
    mu = c.mean(-1, keepdims=True)
    var = ((c - mu) ** 2).mean(-1, keepdims=True)
    c = (c - mu) / jnp.sqrt(var + EPS_LN) * params["feat_gamma"] + params["feat_beta"]
    c = c / jnp.maximum(jnp.linalg.norm(c, axis=-1, keepdims=True), EPS_L2)
    p = params["prototypes"]
    p = p / jnp.maximum(jnp.linalg.norm(p, axis=-1, keepdims=True), EPS_L2)
    masks = jnp.einsum('nd,kmd->nmk', c, p)
    seg = jnp.max(masks, axis=1)
    mu2 = seg.mean(-1, keepdims=True)
    var2 = ((seg - mu2) ** 2).mean(-1, keepdims=True)
    seg = (seg - mu2) / jnp.sqrt(var2 + EPS_LN) * params["mask_gamma"] + params["mask_beta"]
    mask_cls = jax.nn.softmax(seg.reshape(b, K, K), axis=-1)
    mask_pred = jax.nn.sigmoid(pred_masks)
    return jnp.einsum('bqc,bqdhw->bcdhw', mask_cls, mask_pred)


# ------------------------------------ main -------------------------------------
if __name__ == "__main__":
    key = jax.random.PRNGKey(0)
    k_proto, k_logits, k_masks = jax.random.split(key, 3)

    # deterministic parameter init (trunc_normal_(std=0.02) for prototypes,
    # default LayerNorm affine = ones / zeros)
    params = {
        "prototypes": 0.02 * jax.random.truncated_normal(
            k_proto, -2.0, 2.0, (K, M, DPROTO), dtype=jnp.float32),
        "feat_gamma": jnp.ones((DPROTO,), jnp.float32),
        "feat_beta": jnp.zeros((DPROTO,), jnp.float32),
        "mask_gamma": jnp.ones((K,), jnp.float32),
        "mask_beta": jnp.zeros((K,), jnp.float32),
    }

    # synthetic decoder outputs (stand-in for backbone + transformer decoder)
    pred_logits = jax.random.normal(k_logits, (B, DPROTO, K), dtype=jnp.float32)
    pred_masks = jax.random.normal(k_masks, (B, K, DZ, HZ, WZ), dtype=jnp.float32)

    ref = _reference(pred_logits, pred_masks, params)

    # 1) strict semantics check: f32 pred stream vs. f32 reference
    out_f32 = forward_inference(pred_logits, pred_masks, params,
                                pred_stream_dtype=jnp.float32)
    out_f32 = jax.block_until_ready(out_f32)
    assert out_f32.shape == (B, K, DZ, HZ, WZ)
    assert jnp.allclose(out_f32, ref, atol=2e-4, rtol=2e-4), "f32 mismatch vs reference"

    # 2) perf path: bf16 pred stream, checked against the reference fed the same
    #    bf16-quantized mask logits (isolates the intended input quantization).
    out_bf16 = forward_inference(pred_logits, pred_masks, params,
                                 pred_stream_dtype=jnp.bfloat16)
    out_bf16 = jax.block_until_ready(out_bf16)
    ref_q = _reference(pred_logits,
                       pred_masks.astype(jnp.bfloat16).astype(jnp.float32), params)
    assert jnp.allclose(out_bf16, ref_q, atol=5e-4, rtol=5e-4), \
        "bf16-stream mismatch vs quantized reference"

    print("KERNEL_OK")
</pallas_src>

<mosaic_0001>
module attributes {stable_mosaic.version = 11 : i64} {
  func.func @_head_kernel(%arg0: i32, %arg1: memref<1x4x128xf32, #tpu.memory_space<vmem>>, %arg2: memref<1x128xf32, #tpu.memory_space<vmem>>, %arg3: memref<1x128xf32, #tpu.memory_space<vmem>>, %arg4: memref<128x32xf32, #tpu.memory_space<vmem>>, %arg5: memref<1x4xf32, #tpu.memory_space<vmem>>, %arg6: memref<1x4xf32, #tpu.memory_space<vmem>>, %arg7: memref<1x4x4xf32, #tpu.memory_space<vmem>>) attributes {dimension_semantics = [#tpu.dimension_semantics<parallel>], iteration_bounds = array<i64: 2>, scalar_prefetch = 0 : i64, scratch_operands = 0 : i64, tpu.core_type = #tpu.core_type<tc>, window_params = [{transform_indices = @transform_0, window_bounds = array<i64: 1, 4, 128>}, {pipeline_mode = #tpu.pipeline_mode<synchronous>, transform_indices = @transform_1, window_bounds = array<i64: 1, 128>}, {pipeline_mode = #tpu.pipeline_mode<synchronous>, transform_indices = @transform_2, window_bounds = array<i64: 1, 128>}, {pipeline_mode = #tpu.pipeline_mode<synchronous>, transform_indices = @transform_3, window_bounds = array<i64: 128, 32>}, {pipeline_mode = #tpu.pipeline_mode<synchronous>, transform_indices = @transform_4, window_bounds = array<i64: 1, 4>}, {pipeline_mode = #tpu.pipeline_mode<synchronous>, transform_indices = @transform_5, window_bounds = array<i64: 1, 4>}, {transform_indices = @transform_6, window_bounds = array<i64: 1, 4, 4>}]} {
    %c0 = arith.constant 0 : index
    %c0_0 = arith.constant 0 : index
    %c0_1 = arith.constant 0 : index
    %0 = vector.load %arg1[%c0, %c0_0, %c0_1] : memref<1x4x128xf32, #tpu.memory_space<vmem>>, vector<1x4x128xf32>
    %1 = vector.shape_cast %0 : vector<1x4x128xf32> to vector<4x128xf32>
    %2 = tpu.iota {dimensions = array<i32: 1>} : vector<1x128xi32>
    %c80_i32 = arith.constant 80 : i32
    %3 = vector.broadcast %c80_i32 : i32 to vector<1x128xi32>
    %4 = arith.cmpi slt, %2, %3 : vector<1x128xi32>
    %cst = arith.constant dense<0.000000e+00> : vector<4xf32>
    %5 = vector.multi_reduction <add>, %1, %cst [1] : vector<4x128xf32> to vector<4xf32>
    %6 = vector.shape_cast %5 : vector<4xf32> to vector<4x1xf32>
    %cst_2 = arith.constant 1.250000e-02 : f32
    %7 = vector.broadcast %cst_2 : f32 to vector<4x1xf32>
    %8 = arith.mulf %6, %7 : vector<4x1xf32>
    %9 = vector.broadcast %8 : vector<4x1xf32> to vector<4x128xf32>
    %10 = arith.subf %1, %9 : vector<4x128xf32>
    %cst_3 = arith.constant 0.000000e+00 : f32
    %11 = vector.shape_cast %4 : vector<1x128xi1> to vector<1x128xi1>
    %12 = vector.broadcast %11 : vector<1x128xi1> to vector<4x128xi1>
    %13 = vector.broadcast %cst_3 : f32 to vector<4x128xf32>
    %14 = arith.select %12, %10, %13 : vector<4x128xi1>, vector<4x128xf32>
    %15 = arith.mulf %14, %14 : vector<4x128xf32>
    %cst_4 = arith.constant dense<0.000000e+00> : vector<4xf32>
    %16 = vector.multi_reduction <add>, %15, %cst_4 [1] : vector<4x128xf32> to vector<4xf32>
    %17 = vector.shape_cast %16 : vector<4xf32> to vector<4x1xf32>
    %cst_5 = arith.constant 1.250000e-02 : f32
    %18 = vector.broadcast %cst_5 : f32 to vector<4x1xf32>
    %19 = arith.mulf %17, %18 : vector<4x1xf32>
    %cst_6 = arith.constant 9.99999974E-6 : f32
    %20 = vector.broadcast %cst_6 : f32 to vector<4x1xf32>
    %21 = arith.addf %19, %20 : vector<4x1xf32>
    %22 = math.rsqrt %21 : vector<4x1xf32>
    %23 = vector.broadcast %22 : vector<4x1xf32> to vector<4x128xf32>
    %24 = arith.mulf %14, %23 : vector<4x128xf32>
    %c0_7 = arith.constant 0 : index
    %c0_8 = arith.constant 0 : index
    %25 = vector.load %arg2[%c0_7, %c0_8] : memref<1x128xf32, #tpu.memory_space<vmem>>, vector<1x128xf32>
    %26 = vector.broadcast %25 : vector<1x128xf32> to vector<4x128xf32>
    %27 = arith.mulf %24, %26 : vector<4x128xf32>
    %c0_9 = arith.constant 0 : index
    %c0_10 = arith.constant 0 : index
    %28 = vector.load %arg3[%c0_9, %c0_10] : memref<1x128xf32, #tpu.memory_space<vmem>>, vector<1x128xf32>
    %29 = vector.broadcast %28 : vector<1x128xf32> to vector<4x128xf32>
    %30 = arith.addf %27, %29 : vector<4x128xf32>
    %31 = arith.mulf %30, %30 : vector<4x128xf32>
    %cst_11 = arith.constant dense<0.000000e+00> : vector<4xf32>
    %32 = vector.multi_reduction <add>, %31, %cst_11 [1] : vector<4x128xf32> to vector<4xf32>
    %33 = vector.shape_cast %32 : vector<4xf32> to vector<4x1xf32>
    %cst_12 = arith.constant 1.000000e-24 : f32
    %34 = vector.broadcast %cst_12 : f32 to vector<4x1xf32>
    %35 = arith.maximumf %33, %34 : vector<4x1xf32>
    %36 = math.rsqrt %35 : vector<4x1xf32>
    %37 = vector.broadcast %36 : vector<4x1xf32> to vector<4x128xf32>
    %38 = arith.mulf %30, %37 : vector<4x128xf32>
    %c0_13 = arith.constant 0 : index
    %c0_14 = arith.constant 0 : index
    %39 = vector.load %arg4[%c0_13, %c0_14] : memref<128x32xf32, #tpu.memory_space<vmem>>, vector<128x32xf32>
    %cst_15 = arith.constant dense<0.000000e+00> : vector<4x32xf32>
    %40 = tpu.matmul %38, %39, %cst_15 {dimension_numbers = #tpu.dot_dimension_numbers<[1], [0], [0], [1], [0, 0, 1, 1], [], []>} : vector<4x128xf32>, vector<128x32xf32>, vector<4x32xf32> -> vector<4x32xf32>
    %41 = vector.extract_strided_slice %40 {offsets = [0, 0], sizes = [4, 4], strides = [1, 1]} : vector<4x32xf32> to vector<4x4xf32>
    %42 = vector.extract_strided_slice %40 {offsets = [0, 4], sizes = [4, 4], strides = [1, 1]} : vector<4x32xf32> to vector<4x4xf32>
    %43 = arith.maximumf %41, %42 : vector<4x4xf32>
    %44 = vector.extract_strided_slice %40 {offsets = [0, 8], sizes = [4, 4], strides = [1, 1]} : vector<4x32xf32> to vector<4x4xf32>
    %45 = arith.maximumf %43, %44 : vector<4x4xf32>
    %46 = vector.extract_strided_slice %40 {offsets = [0, 12], sizes = [4, 4], strides = [1, 1]} : vector<4x32xf32> to vector<4x4xf32>
    %47 = arith.maximumf %45, %46 : vector<4x4xf32>
    %48 = vector.extract_strided_slice %40 {offsets = [0, 16], sizes = [4, 4], strides = [1, 1]} : vector<4x32xf32> to vector<4x4xf32>
    %49 = arith.maximumf %47, %48 : vector<4x4xf32>
    %50 = vector.extract_strided_slice %40 {offsets = [0, 20], sizes = [4, 4], strides = [1, 1]} : vector<4x32xf32> to vector<4x4xf32>
    %51 = arith.maximumf %49, %50 : vector<4x4xf32>
    %52 = vector.extract_strided_slice %40 {offsets = [0, 24], sizes = [4, 4], strides = [1, 1]} : vector<4x32xf32> to vector<4x4xf32>
    %53 = arith.maximumf %51, %52 : vector<4x4xf32>
    %54 = vector.extract_strided_slice %40 {offsets = [0, 28], sizes = [4, 4], strides = [1, 1]} : vector<4x32xf32> to vector<4x4xf32>
    %55 = arith.maximumf %53, %54 : vector<4x4xf32>
    %cst_16 = arith.constant dense<0.000000e+00> : vector<4xf32>
    %56 = vector.multi_reduction <add>, %55, %cst_16 [1] : vector<4x4xf32> to vector<4xf32>
    %57 = vector.shape_cast %56 : vector<4xf32> to vector<4x1xf32>
    %cst_17 = arith.constant 4.000000e+00 : f32
    %58 = vector.broadcast %cst_17 : f32 to vector<4x1xf32>
    %59 = arith.divf %57, %58 : vector<4x1xf32>
    %60 = vector.broadcast %59 : vector<4x1xf32> to vector<4x4xf32>
    %61 = arith.subf %55, %60 : vector<4x4xf32>
    %62 = arith.mulf %61, %61 : vector<4x4xf32>
    %cst_18 = arith.constant dense<0.000000e+00> : vector<4xf32>
    %63 = vector.multi_reduction <add>, %62, %cst_18 [1] : vector<4x4xf32> to vector<4xf32>
    %64 = vector.shape_cast %63 : vector<4xf32> to vector<4x1xf32>
    %cst_19 = arith.constant 4.000000e+00 : f32
    %65 = vector.broadcast %cst_19 : f32 to vector<4x1xf32>
    %66 = arith.divf %64, %65 : vector<4x1xf32>
    %cst_20 = arith.constant 9.99999974E-6 : f32
    %67 = vector.broadcast %cst_20 : f32 to vector<4x1xf32>
    %68 = arith.addf %66, %67 : vector<4x1xf32>
    %69 = math.rsqrt %68 : vector<4x1xf32>
    %70 = vector.broadcast %69 : vector<4x1xf32> to vector<4x4xf32>
    %71 = arith.mulf %61, %70 : vector<4x4xf32>
    %c0_21 = arith.constant 0 : index
    %c0_22 = arith.constant 0 : index
    %72 = vector.load %arg5[%c0_21, %c0_22] : memref<1x4xf32, #tpu.memory_space<vmem>>, vector<1x4xf32>
    %73 = vector.broadcast %72 : vector<1x4xf32> to vector<4x4xf32>
    %74 = arith.mulf %71, %73 : vector<4x4xf32>
    %c0_23 = arith.constant 0 : index
    %c0_24 = arith.constant 0 : index
    %75 = vector.load %arg6[%c0_23, %c0_24] : memref<1x4xf32, #tpu.memory_space<vmem>>, vector<1x4xf32>
    %76 = vector.broadcast %75 : vector<1x4xf32> to vector<4x4xf32>
    %77 = arith.addf %74, %76 : vector<4x4xf32>
    %cst_25 = arith.constant dense<0xFF800000> : vector<4xf32>
    %78 = vector.multi_reduction <maximumf>, %77, %cst_25 [1] : vector<4x4xf32> to vector<4xf32>
    %cst_26 = arith.constant 0xFF800000 : f32
    %79 = vector.broadcast %cst_26 : f32 to vector<4xf32>
    %80 = arith.maximumf %79, %78 : vector<4xf32>
    %81 = vector.shape_cast %80 : vector<4xf32> to vector<4x1xf32>
    %82 = vector.broadcast %81 : vector<4x1xf32> to vector<4x4xf32>
    %83 = arith.subf %77, %82 : vector<4x4xf32>
    %84 = math.exp %83 : vector<4x4xf32>
    %cst_27 = arith.constant dense<0.000000e+00> : vector<4xf32>
    %85 = vector.multi_reduction <add>, %84, %cst_27 [1] : vector<4x4xf32> to vector<4xf32>
    %86 = vector.shape_cast %85 : vector<4xf32> to vector<4x1xf32>
    %87 = vector.broadcast %86 : vector<4x1xf32> to vector<4x4xf32>
    %88 = arith.divf %84, %87 : vector<4x4xf32>
    %c0_28 = arith.constant 0 : index
    %c0_29 = arith.constant 0 : index
    %c0_30 = arith.constant 0 : index
    %89 = vector.load %arg7[%c0_28, %c0_29, %c0_30] : memref<1x4x4xf32, #tpu.memory_space<vmem>>, vector<1x4x4xf32>
    %90 = vector.shape_cast %89 : vector<1x4x4xf32> to vector<4x4xf32>
    %91 = vector.shape_cast %88 : vector<4x4xf32> to vector<1x4x4xf32>
    tpu.vector_store %arg7[%c0_28, %c0_29, %c0_30], %91 {strides = array<i32>} : memref<1x4x4xf32, #tpu.memory_space<vmem>>, vector<1x4x4xf32>,
    return
  }
  func.func @transform_0(%arg0: i32) -> (i32, i32, i32) {
    %c0_i32 = arith.constant 0 : i32
    %c0_i32_0 = arith.constant 0 : i32
    %c0_i32_1 = arith.constant 0 : i32
    return %arg0, %c0_i32, %c0_i32_0 : i32, i32, i32
  }
  func.func @transform_1(%arg0: i32) -> (i32, i32) {
    %c0_i32 = arith.constant 0 : i32
    %c0_i32_0 = arith.constant 0 : i32
    %c0_i32_1 = arith.constant 0 : i32
    return %c0_i32, %c0_i32_0 : i32, i32
  }
  func.func @transform_2(%arg0: i32) -> (i32, i32) {
    %c0_i32 = arith.constant 0 : i32
    %c0_i32_0 = arith.constant 0 : i32
    %c0_i32_1 = arith.constant 0 : i32
    return %c0_i32, %c0_i32_0 : i32, i32
  }
  func.func @transform_3(%arg0: i32) -> (i32, i32) {
    %c0_i32 = arith.constant 0 : i32
    %c0_i32_0 = arith.constant 0 : i32
    %c0_i32_1 = arith.constant 0 : i32
    return %c0_i32, %c0_i32_0 : i32, i32
  }
  func.func @transform_4(%arg0: i32) -> (i32, i32) {
    %c0_i32 = arith.constant 0 : i32
    %c0_i32_0 = arith.constant 0 : i32
    %c0_i32_1 = arith.constant 0 : i32
    return %c0_i32, %c0_i32_0 : i32, i32
  }
  func.func @transform_5(%arg0: i32) -> (i32, i32) {
    %c0_i32 = arith.constant 0 : i32
    %c0_i32_0 = arith.constant 0 : i32
    %c0_i32_1 = arith.constant 0 : i32
    return %c0_i32, %c0_i32_0 : i32, i32
  }
  func.func @transform_6(%arg0: i32) -> (i32, i32, i32) {
    %c0_i32 = arith.constant 0 : i32
    %c0_i32_0 = arith.constant 0 : i32
    %c0_i32_1 = arith.constant 0 : i32
    return %arg0, %c0_i32, %c0_i32_0 : i32, i32, i32
  }
}

</mosaic_0001>

<bundles_post_ra>
// kernel: tpu_custom_call.1
= control target key start
LH: loop header
LB: loop body
LE: loop exit
PB: predicated region body
PF: predicated region fallthrough
CT: control target
= control target key end

     0   :  { %11 = vsyncpa [#allocation3], 0  ;;  %s841_s0 = inlined_call_operand.vmem [shape: f32[2,4,128], index: 0, kind: input, shape index: {}]   ;;  %s842_s1 = inlined_call_operand.vmem [shape: f32[1,128], index: 1, kind: input, shape index: {}]   ;;  %s843_s2 = inlined_call_operand.vmem [shape: f32[1,128], index: 2, kind: input, shape index: {}]   ;;  %s844_s3 = inlined_call_operand.vmem [shape: f32[128,32], index: 3, kind: input, shape index: {}]   ;;  %s845_s4 = inlined_call_operand.vmem [shape: f32[1,4], index: 4, kind: input, shape index: {}]   ;;  %s846_s5 = inlined_call_operand.vmem [shape: f32[1,4], index: 5, kind: input, shape index: {}]   ;;  %s847_s6 = inlined_call_operand.hbm [shape: f32[2,4,4], index: 6, kind: output, shape index: {}]  }
   0x1   :  { %13 = vsyncpa [#allocation3 + $0x1], 0  ;;  %s688_s21 = smov 0   ;;  %s690_s22 = smov 0  }
   0x2   :  { %s692_s23 = smov 0   ;;  %s694_s24 = smov 0  }
   0x3 LB: > { %s709_s25 = sadd.s32 4294967295, %s643_s24   ;;  %s508_s26 = sadd.s32 4294967294, %s643_s24   ;;  %s643_s24 = sphi %s694_s24, %s853_s24   ;;  %s639_s23 = sphi %s692_s23, %s852_s23   ;;  %s635_s22 = sphi %s690_s22, %s851_s22   ;;  %s631_s21 = sphi %s688_s21, %s850_s21  }
   0x4   : > { %s713_s27 = sadd.s32 1, %s643_s24   ;;  %s157_s28 = sadd.s32 1, %s639_s23 }
   0x5   : > { %s154_s29 = ssub.s32 %s643_s24, %s713_s27  ;;  %p167_p0 = scmp.ne.s32.totalorder %s639_s23, %s635_s22 }
   0x6   : > { %p155_p1 = scmp.eq.s32.totalorder %s154_s29, 0  ;;  %p168_p2 = scmp.eq.s32.totalorder %s709_s25, 1 }
   0x7   : > { %p173_p3 = scmp.ne.s32.totalorder %s635_s22, %s631_s21  ;;  %p174_p4 = scmp.eq.s32.totalorder %s508_s26, 1 }
   0x8   : > { %s724_s30 = scalar_select %p155_p1, %s639_s23, %s157_s28  }
   0x9   : > { %p726_p5 = por %p168_p2, %p167_p0  ;;  %p730_p6 = por %p174_p4, %p173_p3 }
   0xa   : > { %p511_p7 = scmp.ge.s32.totalorder %s643_s24, 1  ;;  %p214_p8 = scmp.lt.s32.totalorder %s643_s24, 3 }
   0xc   : > { %p215_p9 = pnand %p511_p7, %p214_p8 }
   0xd   : > { %p243_p10 = scmp.lt.s32.totalorder (!%p215_p9), %s709_s25, 1  ;;  %s645_s20 = smov (!%p215_p9), 112  }
   0xe   : > { %218 = sbr.rel (%p215_p9) target bundleno = 1225 (0x4c9), region = 44  ;;  %s646_s26 = smov (!%p215_p9), 120  }
   0xf   : > { %s647_s28 = smov (!%p215_p9), 124   ;;  %s648_s29 = smov (!%p215_p9), 116  }
  0x10   : > { %s651_s11 = smov (!%p215_p9), 100   ;;  %s240_s16 = sand.u32 (!%p215_p9), 1, %s635_s22  }
  0x11   : > { %s512_s17 = sshll.u32 (!%p215_p9), %s240_s16, 2  ;;  %s515_s18 = sshll.u32 (!%p215_p9), %s709_s25, 2 }
  0x12   : > { %s601_s14 = scalar_lea.hbm (!%p215_p9), %s847_s6, 8 }
  0x13   : > { %s244_s9 = scalar_select %p243_p10, %s709_s25, 1  ;;  %vm251_vm0 = vcmask 1043456   ;;  %v248_v2 = vlaneseq  ;;  %v318_v11 = vld [vmem:[%s844_s3 + $0x78] sm:$0xff]  ;;  %v317_v12 = vld [vmem:[%s844_s3 + $0x70] sm:$0xff]  ;;  %v316_v14 = vld [vmem:[%s844_s3 + $0x68] sm:$0xff]  ;;  %vm368_vm8 = vcmask 27648  }
  0x14   : > { %319 = vmatpush.msra.mxu0 %v318_v11  ;;  %v315_v16 = vld [vmem:[%s844_s3 + $0x60] sm:$0xff]  ;;  %v314_v17 = vld [vmem:[%s844_s3 + $0x58] sm:$0xff]  ;;  %v313_v32 = vld [vmem:[%s844_s3 + $0x50] sm:$0xff]  ;;  %s434_s25 = scalar_lea.sflag [#allocation3], %s240_s16 }
  0x15   : > { %s513_s10 = sshll.u32 %s244_s9, 2  ;;  %v249_v3 = vand.u32 127, %v248_v2  ;;  %v565_v24 = vld [vmem:[%s842_s1] ss:$0 sm:$0xff]  ;;  %v312_v33 = vld [vmem:[%s844_s3 + $0x48] sm:$0xff]  ;;  %v310_v35 = vld [vmem:[%s844_s3 + $0x38] sm:$0xff] }
  0x16   : > { %s246_s13 = scalar_lea.vmem %s841_s0, %s513_s10  ;;  %320 = vmatpush.msra.mxu0 %v317_v12  ;;  %v566_v27 = vld [vmem:[%s843_s2] ss:$0 sm:$0xff]  ;;  %v309_v36 = vld [vmem:[%s844_s3 + $0x30] sm:$0xff]  ;;  %v308_v37 = vld [vmem:[%s844_s3 + $0x28] sm:$0xff]  ;;  %s649_s9 = smov 108  }
  0x17   : > { %v247_v0 = vld [vmem:[%s246_s13] sm:$0xf]  ;;  %vm250_vm1 = vcmp.lt.s32.totalorder %v249_v3, 80  ;;  %v306_v39 = vld [vmem:[%s844_s3 + $0x18] sm:$0xff]  ;;  %v305_v40 = vld [vmem:[%s844_s3 + $0x10] sm:$0xff]  ;;  %s650_s10 = smov 104  }
  0x18   : > { %v252_v1 = vsel %vm251_vm0, %v247_v0, 0.0  ;;  %321 = vmatpush.msra.mxu0 %v316_v14  ;;  %v311_v34 = vld [vmem:[%s844_s3 + $0x40] sm:$0xff]  ;;  %v304_v41 = vld [vmem:[%s844_s3 + $0x8] sm:$0xff] }
  0x19   : > { %253 = vadd.xlane.f32.xlu0 %v252_v1  ;;  %v307_v38 = vld [vmem:[%s844_s3 + $0x20] sm:$0xff] }
  0x1a   : > { %322 = vmatpush.msra.mxu0 %v315_v16  ;;  %v303_v42 = vld [vmem:[%s844_s3] sm:$0xff] }
  0x1c   : > { %323 = vmatpush.msra.mxu0 %v314_v17 }
  0x1e   : > { %324 = vmatpush.msra.mxu0 %v313_v32 }
  0x20   : > { %325 = vmatpush.msra.mxu0 %v312_v33 }
  0x22   : > { %326 = vmatpush.msra.mxu0 %v311_v34 }
  0x24   : > { %327 = vmatpush.msra.mxu0 %v310_v35 }
  0x26   : > { %328 = vmatpush.msra.mxu0 %v309_v36 }
  0x28   : > { %329 = vmatpush.msra.mxu0 %v308_v37 }
  0x2a   : > { %330 = vmatpush.msra.mxu0 %v307_v38 }
  0x2c   : > { %331 = vmatpush.msra.mxu0 %v306_v39 }
  0x2e   : > { %332 = vmatpush.msra.mxu0 %v305_v40 }
  0x30   : > { %333 = vmatpush.msra.mxu0 %v304_v41 }
  0x32   : > { %334 = vmatpush.msra.mxu0 %v303_v42 }
  0x8c   : > { %v254_v4 = vpop.xlane.xlu0 %253 }
  0x8d   : > { %v255_v5 = vmul.f32 0.0125, %v254_v4 }
  0x8f   : > { %v256_v6 = vsub.f32 %v247_v0, %v255_v5  ;;  %v652_v5 = vmov 4.0  }
  0x91   : > { %v259_v7 = vsel %vm250_vm1, %v256_v6, 0.0 }
  0x92   : > { %v260_v8 = vmul.f32 %v259_v7, %v259_v7 }
  0x94   : > { %v261_v9 = vsel %vm251_vm0, %v260_v8, 0.0 }
  0x95   : > { %262 = vadd.xlane.f32.xlu0 %v261_v9 }
 0x108   : > { %v263_v10 = vpop.xlane.xlu0 %262 }
 0x109   : > { %v264_v13 = vmul.f32 0.0125, %v263_v10 }
 0x10b   : > { %v265_v15 = vadd.f32 1e-05, %v264_v13 }
 0x10d   : > { %569 = vrsqrt.f32 %v265_v15  ;;  %vm272_vm3 = vweird.f32 %v265_v15 }
 0x113   : > { %v570_v18 = vpop.eup %569 }
 0x114   : > { %v267_v19 = vmul.f32 %v570_v18, %v265_v15  ;;  %vm273_vm2 = vweird.f32 %v570_v18 }
 0x115   : > { %vm274_vm4 = vmor %vm272_vm3, %vm273_vm2 }
 0x116   : > { %v268_v20 = vmul.f32 %v570_v18, %v267_v19 }
 0x118   : > { %v269_v21 = vmul.f32 0.5, %v268_v20 }
 0x11a   : > { %v270_v22 = vsub.f32 1.5, %v269_v21 }
 0x11c   : > { %v271_v23 = vmul.f32 %v570_v18, %v270_v22 }
 0x11e   : > { %v275_v25 = vsel %vm274_vm4, %v570_v18, %v271_v23 }
 0x11f   : > { %v276_v26 = vmul.f32 %v275_v25, %v259_v7 }
 0x121   : > { %v281_v28 = vmul.f32 %v565_v24, %v276_v26  ;;  %v567_v26 = vld [vmem:[%s845_s4] ss:$0 sm:$0xff] }
 0x123   : > { %v286_v29 = vadd.f32 %v566_v27, %v281_v28 }
 0x125   : > { %v287_v30 = vmul.f32 %v286_v29, %v286_v29 }
 0x127   : > { %v288_v31 = vsel %vm251_vm0, %v287_v30, 0.0 }
 0x128   : > { %289 = vadd.xlane.f32.xlu1 %v288_v31 }
 0x19b   : > { %v290_v43 = vpop.xlane.xlu1 %289 }
 0x19c   : > { %v291_v44 = vmax.f32 %v290_v43, 1e-24 }
 0x19e   : > { %571 = vrsqrt.f32 %v291_v44  ;;  %vm298_vm6 = vweird.f32 %v291_v44 }
 0x19f   : > { %573 = vrcp.f32 %v652_v5 }
 0x1a4   : > { %v572_v45 = vpop.eup %571 }
 0x1a5   : > { %v293_v46 = vmul.f32 %v572_v45, %v291_v44  ;;  %vm299_vm5 = vweird.f32 %v572_v45  ;;  %v574_v6 = vpop.eup %573 }
 0x1a6   : > { %vm300_vm7 = vmor %vm298_vm6, %vm299_vm5  ;;  %v373_v7 = vmul.f32 4.0, %v574_v6  ;;  %vm377_vm9 = vweird.f32 %v574_v6 }
 0x1a7   : > { %v294_v47 = vmul.f32 %v572_v45, %v293_v46 }
 0x1a8   : > { %v374_v8 = vsub.f32 1.0, %v373_v7 }
 0x1a9   : > { %v295_v48 = vmul.f32 0.5, %v294_v47 }
 0x1aa   : > { %v375_v9 = vmul.f32 %v574_v6, %v374_v8 }
 0x1ab   : > { %v296_v49 = vsub.f32 1.5, %v295_v48 }
 0x1ac   : > { %v376_v10 = vadd.f32 %v574_v6, %v375_v9 }
 0x1ad   : > { %v297_v50 = vmul.f32 %v572_v45, %v296_v49 }
 0x1ae   : > { %v378_v11 = vsel %vm377_vm9, %v574_v6, %v376_v10 }
 0x1af   : > { %v301_v51 = vsel %vm300_vm7, %v572_v45, %v297_v50 }
 0x1b0   : > { %v302_v52 = vmul.f32 %v301_v51, %v286_v29  ;;  %v568_v29 = vld [vmem:[%s846_s5] ss:$0 sm:$0xff] }
 0x1b2   : > { %335 = vmatmul.f32.vlgmr.msra.gmra.mxu0 %v302_v52 }
 0x22f   : > { %v336_v53 = vpop.f32.mrf.mxu0 }
 0x230   : > { %352 = vrot.lane.b32.xlu0 %v336_v53, %s645_s20  ;;  %344 = vrot.lane.b32.xlu2 %v336_v53, %s646_s26  ;;  %s444_s26 = scalar_lea.hbm %s847_s6, %s515_s18 }
 0x231   : > { %340 = vrot.lane.b32.xlu1 %v336_v53, %s647_s28  ;;  %s242_s28 = scalar_lea.vmem [#allocation2], %s512_s17 }
 0x238   : > { %348 = vrot.lane.b32.xlu2 %v336_v53, %s648_s29  ;;  %s446_s29 = sshll.u32 %s242_s28, 4  ;;  %s447_s29 = int_to_ptr.vmem [resolvable:$true] %s446_s29 }
 0x240   : > { %356 = vrot.lane.b32.xlu2 %v336_v53, %s649_s9  ;;  %s448_s9 = sshll.u32 %s444_s26, 4  ;;  %s449_s9 = int_to_ptr.hbm [resolvable:$true] %s448_s9 }
 0x248   : > { %360 = vrot.lane.b32.xlu2 %v336_v53, %s650_s10  ;;  %s595_s10 = sshra.s32 %s449_s9, 4  ;;  %s596_s10 = int_to_ptr.hbm [resolvable:$true] %s595_s10 }
 0x249   : > { %p602_p0 = scmp.lt.s32.totalorder %s596_s10, %s847_s6 }
 0x250   : > { %364 = vrot.lane.b32.xlu2 %v336_v53, %s651_s11  ;;  %s597_s11 = scalar_lea.hbm %s596_s10, 4 }
 0x251   : > { %p598_p11 = scmp.ne.s32.totalorder %s596_s10, %s597_s11  ;;  %p603_p1 = scmp.lt.s32.totalorder %s601_s14, %s597_s11 }
 0x253   : > { %p599_p12 = pnand %p598_p11, %p726_p5  ;;  %p604_p2 = por %p603_p1, %p602_p0 }
 0x255   : > { %p600_p13 = pneg %p599_p12 }
 0x257   : > { %p605_p3 = pnand %p604_p2, %p600_p13 }
 0x28a   : > { %v345_v54 = vpop.permute.xlu2 %344 }
 0x292   : > { %v349_v55 = vpop.permute.xlu2 %348 }
 0x29a   : > { %v357_v56 = vpop.permute.xlu2 %356 }
 0x2a2   : > { %v361_v59 = vpop.permute.xlu2 %360  ;;  %v353_v62 = vpop.permute.xlu0 %352 }
 0x2a3   : > { %v341_v57 = vpop.permute.xlu1 %340 }
 0x2a4   : > { %v343_v58 = vmax.f32 %v336_v53, %v341_v57 }
 0x2a6   : > { %v347_v60 = vmax.f32 %v343_v58, %v345_v54 }
 0x2a8   : > { %v351_v61 = vmax.f32 %v347_v60, %v349_v55 }
 0x2aa   : > { %v355_v63 = vmax.f32 %v351_v61, %v353_v62  ;;  %v365_v2 = vpop.permute.xlu2 %364 }
 0x2ac   : > { %v359_v0 = vmax.f32 %v355_v63, %v357_v56 }
 0x2ae   : > { %v363_v1 = vmax.f32 %v359_v0, %v361_v59 }
 0x2b0   : > { %v367_v3 = vmax.f32 %v363_v1, %v365_v2 }
 0x2b2   : > { %v369_v4 = vsel %vm368_vm8, %v367_v3, 0.0 }
 0x2b3   : > { %370 = vadd.xlane.f32.xlu1 %v369_v4 }
 0x326   : > { %v371_v12 = vpop.xlane.xlu1 %370 }
 0x327   : > { %v379_v13 = vmul.f32 %v378_v11, %v371_v12 }
 0x329   : > { %v380_v14 = vsub.f32 %v367_v3, %v379_v13 }
 0x32b   : > { %v381_v15 = vmul.f32 %v380_v14, %v380_v14 }
 0x32d   : > { %v382_v16 = vsel %vm368_vm8, %v381_v15, 0.0 }
 0x32e   : > { %383 = vadd.xlane.f32.xlu0 %v382_v16 }
 0x3a1   : > { %v384_v17 = vpop.xlane.xlu0 %383 }
 0x3a2   : > { %v385_v18 = vmul.f32 %v384_v17, %v378_v11 }
 0x3a4   : > { %v386_v19 = vadd.f32 1e-05, %v385_v18 }
 0x3a6   : > { %575 = vrsqrt.f32 %v386_v19  ;;  %vm393_vm11 = vweird.f32 %v386_v19 }
 0x3ac   : > { %v576_v20 = vpop.eup %575 }
 0x3ad   : > { %v388_v21 = vmul.f32 %v576_v20, %v386_v19  ;;  %vm394_vm10 = vweird.f32 %v576_v20 }
 0x3ae   : > { %vm395_vm12 = vmor %vm393_vm11, %vm394_vm10 }
 0x3af   : > { %v389_v22 = vmul.f32 %v576_v20, %v388_v21 }
 0x3b1   : > { %v390_v23 = vmul.f32 0.5, %v389_v22 }
 0x3b3   : > { %v391_v24 = vsub.f32 1.5, %v390_v23 }
 0x3b5   : > { %v392_v25 = vmul.f32 %v576_v20, %v391_v24 }
 0x3b7   : > { %v396_v27 = vsel %vm395_vm12, %v576_v20, %v392_v25 }
 0x3b8   : > { %v397_v28 = vmul.f32 %v396_v27, %v380_v14 }
 0x3ba   : > { %v402_v30 = vmul.f32 %v567_v26, %v397_v28 }
 0x3bc   : > { %v407_v31 = vadd.f32 %v568_v29, %v402_v30 }
 0x3be   : > { %v408_v32 = vsel %vm368_vm8, %v407_v31, -inf }
 0x3bf   : > { %409 = vmax.xlane.f32.xlu2 %v408_v32 }
 0x432   : > { %v410_v33 = vpop.xlane.xlu2 %409 }
 0x433   : > { %v411_v34 = vsub.f32 %v407_v31, %v410_v33 }
 0x435   : > { %v412_v35 = vmul.f32 1.442695, %v411_v34 }
 0x437   : > { %577 = vpow2.f32 %v412_v35 }
 0x43d   : > { %v578_v36 = vpop.eup %577 }
 0x43e   : > { %v414_v37 = vsel %vm368_vm8, %v578_v36, 0.0 }
 0x43f   : > { %415 = vadd.xlane.f32.xlu1 %v414_v37 }
 0x4b2   : > { %v416_v38 = vpop.xlane.xlu1 %415 }
 0x4b3   : > { %579 = vrcp.f32 %v416_v38  ;;  %v428_v42 = vand.u32 2147483648, %v416_v38  ;;  %v426_v44 = vand.u32 2147483647, %v416_v38  ;;  %vm422_vm14 = vweird.f32 %v416_v38 }
 0x4b5   : > { %v429_v46 = vor.u32 1.1754944e-38, %v428_v42  ;;  %vm427_vm0 = vcmp.eq.f32.partialorder %v426_v44, 8.507059e+37 }
 0x4b9   : > { %v580_v39 = vpop.eup %579 }
 0x4ba   : > { %v418_v40 = vmul.f32 %v580_v39, %v416_v38  ;;  %vm423_vm13 = vweird.f32 %v580_v39 }
 0x4bb   : > { %vm424_vm15 = vmor %vm422_vm14, %vm423_vm13 }
 0x4bc   : > { %v419_v41 = vsub.f32 1.0, %v418_v40 }
 0x4be   : > { %v420_v43 = vmul.f32 %v580_v39, %v419_v41 }
 0x4c0   : > { %v421_v45 = vadd.f32 %v580_v39, %v420_v43 }
 0x4c2   : > { %v425_v47 = vsel %vm424_vm15, %v580_v39, %v421_v45 }
 0x4c3   : > { %v430_v48 = vsel %vm427_vm0, %v429_v46, %v425_v47 }
 0x4c4   : > { %v431_v49 = vmul.f32 %v578_v36, %v430_v48 }
 0x4c6   : > { %432 = vst.msk [vmem:[%s242_s28] sm:$0xf] %vm368_vm8, %v431_v49 }
 0x4c7   : > { %608 = shalt.err (!%p605_p3)
}
 0x4c8   : > { %518 = dma.vmem_to_hbm [thread:$0]  (%p726_p5), %s447_s29, 64, %s449_s9, %s434_s25  }
 0x4c9 PF: > { %p524_p4 = scmp.ge.s32.totalorder %s643_s24, 2  ;;  %s460_s16 = sand.u32 1, %s631_s21  }
 0x4ca   : > { %s461_s18 = scalar_lea.sflag [#allocation3], %s460_s16 }
 0x4cb   : > { %p521_p7 = pnand %p524_p4, %p730_p6 }
 0x4cd   : > { %p522_p8 = pneg %p521_p7 }
 0x4cf   : > { %626 = dma.done.wait (%p522_p8), %s461_s18, 64  }
 0x4d0   : > { %628 = vsyncadd (%p522_p8), %s461_s18, 4294967232  ;;  %p16_p9 = scmp.ge.s32.totalorder %s713_s27, 4   ;;  %s850_s21 = smov %s635_s22 }
 0x4d1   : > { %s851_s22 = smov %s639_s23  ;;  %s852_s23 = smov %s724_s30 }
 0x4d2   : > { %s853_s24 = smov %s713_s27  ;;  %18 = sbr.rel (!%p16_p9) target bundleno = 3 (0x3), region = 79 }
 0x4d7   :  { %467 = vsyncpa [#allocation3], 1 }
 0x4d8   :  { %469 = vsyncpa [#allocation3 + $0x1], 1 }

</bundles_post_ra>
